<compile_context>
chip_gen: v7x
topology: tpu7x:2x2x1
jax: 0.10.0
libtpu: 0.0.40
codegen_flags: <defaults>
</compile_context>

<pallas_src>
import math
import functools

import numpy as np
import jax
import jax.numpy as jnp
from jax import lax
from jax.experimental import pallas as pl
from jax.experimental.pallas import tpu as pltpu

# ----- module "constructor" parameters (deterministic, in-script) -----------
SIZE = 0.3        # alpha for CVaR (must be <= 1)
REG = 0.5         # entropy regularization strength (> 0 -> bisection path)
TOL = 1e-4
MAX_ITER = 1000
GEOMETRY = "cvar"

LANES = 128
SMALL_M_THRESHOLD = 16384   # below this the kernel is latency-bound -> K-section
EXP_CLAMP = 80.0            # clamp scalar exponent; e^80 is finite in f32


def _robust_loss_cvar_kernel(v_hbm_ref, out_ref, v_vmem, *,
                             m, size, reg, tol, probes, max_outer):
    """Entropy-regularized CVaR robust loss on one batch of losses.

    v_hbm_ref: (R, 128) f32 slab in HBM/ANY (copied once into v_vmem).
    Entries with flat index >= m are padding; they are masked in-kernel.
    """
    # One-shot copy HBM -> VMEM (no double-buffer for a block read many times).
    pltpu.sync_copy(v_hbm_ref, v_vmem)

    rows = v_vmem.shape[0]
    regf = jnp.float32(reg)
    inv_reg = jnp.float32(1.0 / reg)
    inv_m = jnp.float32(1.0 / m)
    log_m = jnp.float32(math.log(m))
    log_cap = jnp.float32(-math.log(size))          # log(1/size)
    capf = jnp.float32(1.0 / size)
    tolf = jnp.float32(tol)
    clampf = jnp.float32(EXP_CLAMP)

    # Explicit pad mask (row-major flat index), applied once to v/reg so no
    # downstream math depends on the wrapper's pad value or on reg's magnitude.
    flat_idx = (lax.broadcasted_iota(jnp.int32, (rows, LANES), 0) * LANES
                + lax.broadcasted_iota(jnp.int32, (rows, LANES), 1))
    valid = flat_idx < m
    # Raw v is never kept live: only vr = v/reg (pads -> -1e30, finite).
    vr = jnp.where(valid, v_vmem[...] * inv_reg, jnp.float32(-1.0e30))

    vr_max = jnp.max(vr)                            # pads are -1e30 -> ignored
    # Hot-loop exp hoisted: per-element exp computed exactly once.
    e_v = jnp.exp(vr - vr_max)                      # pads -> exactly 0

    def target_fast(eta):
        # 1 - sum_i min(exp((v_i-eta)/reg), 1/size)/m, with the element exp
        # factored as e_v * exp(vr_max - eta/reg): one scalar exp + VPU sweep.
        # The scalar exponent is clamped so padded rows (e_v == 0) never see
        # 0 * inf; the clamp can only bind for |v_max - v_i|/reg > ~80, i.e.
        # far outside the regimes this kernel probes after bracketing.
        s = jnp.exp(jnp.minimum(vr_max - eta * inv_reg, clampf))
        return jnp.float32(1.0) - inv_m * jnp.sum(jnp.minimum(e_v * s, capf))

    def target_logspace(eta):
        # Exact capped-exponent form (full-tile exp).  Used only in the bracket
        # expansion, where eta can be arbitrarily far below the data range.
        x = jnp.minimum(vr - eta * inv_reg, log_cap)
        return jnp.float32(1.0) - inv_m * jnp.sum(jnp.exp(x))

    # Bracket init: eta_min = reg * logsumexp(v/reg - log m) (reuses e_v),
    #               eta_max = max(v).
    lse = vr_max - log_m + jnp.log(jnp.sum(e_v))
    eta_min0 = regf * lse
    eta_max0 = regf * vr_max

    lower0 = target_fast(eta_min0)
    pre_conv = jnp.abs(lower0) <= tolf              # best_response early exit

    def _early():
        return eta_min0

    def _solve():
        upper0 = target_fast(eta_max0)              # only paid when needed

        # ---- bracket expansion (mirrors `while lower > 0 or upper < 0`) ----
        # Termination is guaranteed for size < 1 because the capped target
        # tends to 1 - 1/size < 0 as eta -> -inf and to 1 > 0 as eta -> +inf;
        # the iteration cap below is purely defensive.
        def exp_cond(state):
            cnt, _, _, lo, hi = state
            return jnp.logical_and(cnt < 128, jnp.logical_or(lo > 0, hi < 0))

        def exp_body(state):
            cnt, emin, emax, lo, hi = state
            length = emax - emin
            emax1 = jnp.where(lo > 0, emin, emax)
            emin1 = jnp.where(lo > 0, emin - 2.0 * length, emin)
            emin2 = jnp.where(hi < 0, emax1, emin1)
            emax2 = jnp.where(hi < 0, emax1 + 2.0 * length, emax1)
            # Two independent passes: no (2R,128) concatenate temporary.
            lo2 = target_logspace(emin2)
            hi2 = target_logspace(emax2)
            return cnt + 1, emin2, emax2, lo2, hi2

        _, emin, emax, _, _ = lax.while_loop(
            exp_cond, exp_body,
            (jnp.int32(0), eta_min0, eta_max0, lower0, upper0))

        # ---- K-section search with early exit -------------------------------
        # `probes` probe etas per round trip (independent sweeps), bracket
        # shrinks (probes+1)x per iteration; stop as soon as some probe hits
        # |target| <= tol.  probes == 1 degenerates to plain bisection.
        K = probes

        def sect_cond(state):
            it, _, _, _, conv = state
            return jnp.logical_and(it < max_outer, conv == 0)

        def sect_body(state):
            it, a, b, eta_c, conv = state
            h = (b - a) / jnp.float32(K + 1)
            t_vals = []
            for k in range(K):                       # static unroll; probes are
                eta_k = a + h * jnp.float32(k + 1)   # independent -> overlap
                t_vals.append(target_fast(eta_k))
            # target is increasing in eta: the root sub-bracket starts after
            # the last probe with t < 0.
            nn = jnp.float32(0.0)
            for t in t_vals:
                nn = nn + jnp.where(t < 0, jnp.float32(1.0), jnp.float32(0.0))
            a_new = a + h * nn
            b_new = a + h * (nn + 1.0)
            # best probe (min |target|) for the tolerance early exit
            best_abs = jnp.abs(t_vals[0])
            best_eta = a + h
            for k in range(1, K):
                eta_k = a + h * jnp.float32(k + 1)
                tk_abs = jnp.abs(t_vals[k])
                take = tk_abs < best_abs
                best_abs = jnp.where(take, tk_abs, best_abs)
                best_eta = jnp.where(take, eta_k, best_eta)
            hit = best_abs <= tolf
            return (it + 1, a_new, b_new,
                    jnp.where(hit, best_eta, eta_c),
                    jnp.where(hit, jnp.int32(1), conv))

        _, a_f, b_f, eta_c, conv = lax.while_loop(
            sect_cond, sect_body,
            (jnp.int32(0), emin, emax, jnp.float32(0.0), jnp.int32(0)))
        return jnp.where(conv == 1, eta_c, 0.5 * (a_f + b_f))

    eta_star = lax.cond(pre_conv, _early, _solve)

    # ---- robust loss value: <p, v> - reg * KL(p || uniform) ----------------
    # x = log(m * p) is analytic; padded rows have vr = -1e30 (finite), so
    # p = 0 exactly and p*(x - log m) = 0 (no 0*log(0) NaN, no 0*inf).
    x = jnp.minimum(vr - eta_star * inv_reg, log_cap)
    p = jnp.exp(x) * inv_m
    kl = log_m + jnp.sum(p * (x - log_m))
    # <p, v> = reg * <p, v/reg>: raw v is not part of the live set.
    out_ref[0, 0] = regf * jnp.sum(p * vr) - regf * kl


@functools.partial(jax.jit, static_argnames=("size", "reg", "tol", "max_iter"))
def robust_loss(v, *, size=SIZE, reg=REG, tol=TOL, max_iter=MAX_ITER):
    """RobustLoss(size, reg, 'cvar').forward(v) for a 1-D losses vector v."""
    m = v.shape[0]
    v32 = v.astype(jnp.float32)

    if size == 0:                                   # is_erm branch
        return jnp.mean(v32)
    if size == 1.0:                                 # uniform best response, KL = 0
        return jnp.mean(v32)

    # Sublane-dense layout: pad to a multiple of 128 lanes, reshape to (R, 128).
    # The pad value is irrelevant (the kernel masks by flat index).
    m_pad = ((m + LANES - 1) // LANES) * LANES
    if m_pad != m:
        v32 = jnp.concatenate([v32, jnp.zeros((m_pad - m,), jnp.float32)])
    rows = m_pad // LANES
    v2d = v32.reshape(rows, LANES)

    # Latency-bound small/medium m -> K-section (8 probes / round trip);
    # throughput-bound large m -> plain bisection (max bits per sweep).
    probes = 8 if m <= SMALL_M_THRESHOLD else 1
    max_outer = min(int(max_iter),
                    int(math.ceil(48.0 / math.log2(probes + 1))))

    # VMEM budget sized from the slab (scratch copy + vr + e_v + sweep temps),
    # not a hard-coded constant.  Capped below v5e/v6e physical; on v7x
    # (64 MiB/TC) very large m would need the chunked fallback (see TODO).
    slab_bytes = rows * LANES * 4
    vmem_limit = int(min(100 * 1024 * 1024,
                         max(16 * 1024 * 1024, 8 * slab_bytes + (2 << 20))))

    kernel = functools.partial(
        _robust_loss_cvar_kernel,
        m=m, size=size, reg=reg, tol=tol, probes=probes, max_outer=max_outer)

    out = pl.pallas_call(
        kernel,
        out_shape=jax.ShapeDtypeStruct((1, 1), jnp.float32),
        grid=(1,),
        in_specs=[pl.BlockSpec(memory_space=pl.ANY)],   # single copy, no 2nd buffer
        out_specs=pl.BlockSpec(memory_space=pltpu.MemorySpace.SMEM),
        scratch_shapes=[pltpu.VMEM((rows, LANES), jnp.float32)],
        compiler_params=pltpu.CompilerParams(
            dimension_semantics=("arbitrary",),
            vmem_limit_bytes=vmem_limit,
        ),
    )(v2d)
    return out[0, 0]


# ----- pure NumPy reference (mirrors the PyTorch code) ----------------------
def _robust_loss_ref(v, size, reg, tol, max_iter):
    v = np.asarray(v, dtype=np.float64)
    m = v.shape[0]

    def p_of(eta):
        return np.minimum(np.exp((v - eta) / reg), 1.0 / size) / m

    def target(eta):
        return 1.0 - p_of(eta).sum()

    x0 = v / reg - np.log(m)
    eta_min = reg * (np.max(x0) + np.log(np.sum(np.exp(x0 - np.max(x0)))))
    eta_max = v.max()

    if abs(target(eta_min)) <= tol:
        p = p_of(eta_min)
    else:
        lower, upper = target(eta_min), target(eta_max)
        while lower > 0 or upper < 0:
            length = eta_max - eta_min
            if lower > 0:
                eta_max = eta_min
                eta_min = eta_min - 2 * length
            if upper < 0:
                eta_min = eta_max
                eta_max = eta_max + 2 * length
            lower, upper = target(eta_min), target(eta_max)
        eta = 0.5 * (eta_min + eta_max)
        converged = False
        for _ in range(max_iter):
            eta = 0.5 * (eta_min + eta_max)
            val = target(eta)
            if abs(val) <= tol:
                converged = True
                break
            if val > 0:
                eta_max = eta
            elif val < 0:
                eta_min = eta
        if not converged:
            eta = 0.5 * (eta_min + eta_max)
        p = p_of(eta)

    kl = np.log(m) + np.sum(p * np.log(p))
    return float(np.dot(p, v) - reg * kl)


if __name__ == "__main__":
    key = jax.random.PRNGKey(0)

    # main case: batch of 256 per-example losses (exact multiple of 128 lanes)
    m = 256
    v = jax.random.normal(key, (m,), dtype=jnp.float32)
    loss = jax.block_until_ready(robust_loss(v))
    ref = _robust_loss_ref(np.asarray(v), SIZE, REG, TOL, MAX_ITER)
    assert np.isfinite(float(loss)), float(loss)
    assert abs(float(loss) - ref) < 1e-2, (float(loss), ref)

    # padded case: m not a multiple of 128
    v2 = jax.random.normal(jax.random.PRNGKey(0), (200,), dtype=jnp.float32)
    loss2 = jax.block_until_ready(robust_loss(v2))
    ref2 = _robust_loss_ref(np.asarray(v2), SIZE, REG, TOL, MAX_ITER)
    assert abs(float(loss2) - ref2) < 1e-2, (float(loss2), ref2)

    print("KERNEL_OK")
</pallas_src>

<mosaic_0001>
module attributes {stable_mosaic.version = 11 : i64} {
  func.func @_robust_loss_cvar_kernel(%arg0: i32, %arg1: memref<2x128xf32, #tpu.memory_space<any>>, %arg2: memref<1x1xf32, #tpu.memory_space<smem>>, %arg3: memref<2x128xf32, #tpu.memory_space<vmem>>) attributes {dimension_semantics = [#tpu.dimension_semantics<arbitrary>], iteration_bounds = array<i64: 1>, scalar_prefetch = 0 : i64, scratch_operands = 1 : i64, tpu.core_type = #tpu.core_type<tc>, window_params = [{}, {transform_indices = @transform_1, window_bounds = array<i64: 1, 1>}]} {
    "tpu.region"() ({
      %72 = tpu.sem_alloc : memref<!tpu.dma_semaphore, #tpu.memory_space<semaphore_mem>>
      tpu.enqueue_dma source(%arg1 : memref<2x128xf32, #tpu.memory_space<any>>) target(%arg3 : memref<2x128xf32, #tpu.memory_space<vmem>>) target_semaphore(%72 : memref<!tpu.dma_semaphore, #tpu.memory_space<semaphore_mem>>)
      tpu.wait_dma2 semaphore(%72 : memref<!tpu.dma_semaphore, #tpu.memory_space<semaphore_mem>>) src(%arg1 : memref<2x128xf32, #tpu.memory_space<any>>) dst(%arg3 : memref<2x128xf32, #tpu.memory_space<vmem>>)
      tpu.yield
    }) : () -> ()
    %0 = tpu.iota {dimensions = array<i32: 0>} : vector<2x128xi32>
    %c128_i32 = arith.constant 128 : i32
    %1 = vector.broadcast %c128_i32 : i32 to vector<2x128xi32>
    %2 = arith.muli %0, %1 : vector<2x128xi32>
    %3 = tpu.iota {dimensions = array<i32: 1>} : vector<2x128xi32>
    %4 = arith.addi %2, %3 : vector<2x128xi32>
    %c256_i32 = arith.constant 256 : i32
    %5 = vector.broadcast %c256_i32 : i32 to vector<2x128xi32>
    %6 = arith.cmpi slt, %4, %5 : vector<2x128xi32>
    %c0 = arith.constant 0 : index
    %c0_0 = arith.constant 0 : index
    %7 = vector.load %arg3[%c0, %c0_0] : memref<2x128xf32, #tpu.memory_space<vmem>>, vector<2x128xf32>
    %cst = arith.constant 2.000000e+00 : f32
    %8 = vector.broadcast %cst : f32 to vector<2x128xf32>
    %9 = arith.mulf %7, %8 : vector<2x128xf32>
    %cst_1 = arith.constant -1.000000e+30 : f32
    %10 = vector.broadcast %cst_1 : f32 to vector<2x128xf32>
    %11 = arith.select %6, %9, %10 : vector<2x128xi1>, vector<2x128xf32>
    %12 = vector.shape_cast %11 : vector<2x128xf32> to vector<1x2x128xf32>
    %cst_2 = arith.constant dense<0xFF800000> : vector<1xf32>
    %13 = vector.multi_reduction <maximumf>, %12, %cst_2 [1, 2] : vector<1x2x128xf32> to vector<1xf32>
    %14 = vector.shape_cast %13 : vector<1xf32> to vector<1x1x1xf32>
    %15 = vector.extract %14[0, 0, 0] : f32 from vector<1x1x1xf32>
    %16 = vector.broadcast %15 : f32 to vector<2x128xf32>
    %17 = arith.subf %11, %16 : vector<2x128xf32>
    %18 = math.exp %17 : vector<2x128xf32>
    %cst_3 = arith.constant 5.54517746 : f32
    %19 = arith.subf %15, %cst_3 : f32
    %20 = vector.shape_cast %18 : vector<2x128xf32> to vector<1x2x128xf32>
    %cst_4 = arith.constant dense<0.000000e+00> : vector<1xf32>
    %21 = vector.multi_reduction <add>, %20, %cst_4 [1, 2] : vector<1x2x128xf32> to vector<1xf32>
    %22 = vector.shape_cast %21 : vector<1xf32> to vector<1x1x1xf32>
    %23 = vector.extract %22[0, 0, 0] : f32 from vector<1x1x1xf32>
    %24 = math.log %23 : f32
    %25 = arith.addf %19, %24 : f32
    %cst_5 = arith.constant 5.000000e-01 : f32
    %26 = arith.mulf %cst_5, %25 : f32
    %cst_6 = arith.constant 5.000000e-01 : f32
    %27 = arith.mulf %cst_6, %15 : f32
    %cst_7 = arith.constant 2.000000e+00 : f32
    %28 = arith.mulf %26, %cst_7 : f32
    %29 = arith.subf %15, %28 : f32
    %cst_8 = arith.constant 8.000000e+01 : f32
    %30 = arith.minimumf %29, %cst_8 : f32
    %31 = math.exp %30 : f32
    %32 = vector.broadcast %31 : f32 to vector<2x128xf32>
    %33 = arith.mulf %18, %32 : vector<2x128xf32>
    %cst_9 = arith.constant 3.33333325 : f32
    %34 = vector.broadcast %cst_9 : f32 to vector<2x128xf32>
    %35 = arith.minimumf %33, %34 : vector<2x128xf32>
    %36 = vector.shape_cast %35 : vector<2x128xf32> to vector<1x2x128xf32>
    %cst_10 = arith.constant dense<0.000000e+00> : vector<1xf32>
    %37 = vector.multi_reduction <add>, %36, %cst_10 [1, 2] : vector<1x2x128xf32> to vector<1xf32>
    %38 = vector.shape_cast %37 : vector<1xf32> to vector<1x1x1xf32>
    %39 = vector.extract %38[0, 0, 0] : f32 from vector<1x1x1xf32>
    %cst_11 = arith.constant 3.906250e-03 : f32
    %40 = arith.mulf %cst_11, %39 : f32
    %cst_12 = arith.constant 1.000000e+00 : f32
    %41 = arith.subf %cst_12, %40 : f32
    %42 = math.absf %41 : f32
    %cst_13 = arith.constant 9.99999974E-5 : f32
    %43 = arith.cmpf ole, %42, %cst_13 : f32
    %44 = arith.extui %43 : i1 to i32
    %cst_14 = arith.constant 2.000000e+00 : f32
    %cst_15 = arith.constant 8.000000e+01 : f32
    %cst_16 = arith.constant 3.33333325 : f32
    %cst_17 = arith.constant 3.906250e-03 : f32
    %cst_18 = arith.constant 1.20397282 : f32
    %cst_19 = arith.constant 9.99999974E-5 : f32
    %c0_i32 = arith.constant 0 : i32
    %45 = arith.cmpi ne, %44, %c0_i32 : i32
    %46 = scf.if %45 -> (f32) {
      scf.yield %26 : f32
    } else {
      %72 = arith.mulf %27, %cst_14 : f32
      %73 = arith.subf %15, %72 : f32
      %74 = arith.minimumf %73, %cst_15 : f32
      %75 = math.exp %74 : f32
      %76 = vector.broadcast %75 : f32 to vector<2x128xf32>
      %77 = arith.mulf %18, %76 : vector<2x128xf32>
      %78 = vector.broadcast %cst_16 : f32 to vector<2x128xf32>
      %79 = arith.minimumf %77, %78 : vector<2x128xf32>
      %80 = vector.shape_cast %79 : vector<2x128xf32> to vector<1x2x128xf32>
      %cst_31 = arith.constant dense<0.000000e+00> : vector<1xf32>
      %81 = vector.multi_reduction <add>, %80, %cst_31 [1, 2] : vector<1x2x128xf32> to vector<1xf32>
      %82 = vector.shape_cast %81 : vector<1xf32> to vector<1x1x1xf32>
      %83 = vector.extract %82[0, 0, 0] : f32 from vector<1x1x1xf32>
      %84 = arith.mulf %cst_17, %83 : f32
      %cst_32 = arith.constant 1.000000e+00 : f32
      %85 = arith.subf %cst_32, %84 : f32
      %c0_i32_33 = arith.constant 0 : i32
      %86:5 = scf.while (%arg4 = %c0_i32_33, %arg5 = %26, %arg6 = %27, %arg7 = %41, %arg8 = %85) : (i32, f32, f32, f32, f32) -> (i32, f32, f32, f32, f32) {
        %c128_i32_38 = arith.constant 128 : i32
        %92 = arith.cmpi slt, %arg4, %c128_i32_38 : i32
        %cst_39 = arith.constant 0.000000e+00 : f32
        %93 = arith.cmpf ogt, %arg7, %cst_39 : f32
        %cst_40 = arith.constant 0.000000e+00 : f32
        %94 = arith.cmpf olt, %arg8, %cst_40 : f32
        %95 = arith.ori %93, %94 : i1
        %96 = arith.andi %92, %95 : i1
        scf.condition(%96) %arg4, %arg5, %arg6, %arg7, %arg8 : i32, f32, f32, f32, f32
      } do {
      ^bb0(%arg4: i32, %arg5: f32, %arg6: f32, %arg7: f32, %arg8: f32):
        %92 = arith.subf %arg6, %arg5 : f32
        %cst_38 = arith.constant 0.000000e+00 : f32
        %93 = arith.cmpf ogt, %arg7, %cst_38 : f32
        %94 = arith.select %93, %arg5, %arg6 : f32
        %cst_39 = arith.constant 0.000000e+00 : f32
        %95 = arith.cmpf ogt, %arg7, %cst_39 : f32
        %cst_40 = arith.constant 2.000000e+00 : f32
        %96 = arith.mulf %cst_40, %92 : f32
        %97 = arith.subf %arg5, %96 : f32
        %98 = arith.select %95, %97, %arg5 : f32
        %cst_41 = arith.constant 0.000000e+00 : f32
        %99 = arith.cmpf olt, %arg8, %cst_41 : f32
        %100 = arith.select %99, %94, %98 : f32
        %cst_42 = arith.constant 0.000000e+00 : f32
        %101 = arith.cmpf olt, %arg8, %cst_42 : f32
        %cst_43 = arith.constant 2.000000e+00 : f32
        %102 = arith.mulf %cst_43, %92 : f32
        %103 = arith.addf %94, %102 : f32
        %104 = arith.select %101, %103, %94 : f32
        %105 = arith.mulf %100, %cst_14 : f32
        %106 = vector.broadcast %105 : f32 to vector<2x128xf32>
        %107 = arith.subf %11, %106 : vector<2x128xf32>
        %108 = vector.broadcast %cst_18 : f32 to vector<2x128xf32>
        %109 = arith.minimumf %107, %108 : vector<2x128xf32>
        %110 = math.exp %109 : vector<2x128xf32>
        %111 = vector.shape_cast %110 : vector<2x128xf32> to vector<1x2x128xf32>
        %cst_44 = arith.constant dense<0.000000e+00> : vector<1xf32>
        %112 = vector.multi_reduction <add>, %111, %cst_44 [1, 2] : vector<1x2x128xf32> to vector<1xf32>
        %113 = vector.shape_cast %112 : vector<1xf32> to vector<1x1x1xf32>
        %114 = vector.extract %113[0, 0, 0] : f32 from vector<1x1x1xf32>
        %115 = arith.mulf %cst_17, %114 : f32
        %cst_45 = arith.constant 1.000000e+00 : f32
        %116 = arith.subf %cst_45, %115 : f32
        %117 = arith.mulf %104, %cst_14 : f32
        %118 = vector.broadcast %117 : f32 to vector<2x128xf32>
        %119 = arith.subf %11, %118 : vector<2x128xf32>
        %120 = vector.broadcast %cst_18 : f32 to vector<2x128xf32>
        %121 = arith.minimumf %119, %120 : vector<2x128xf32>
        %122 = math.exp %121 : vector<2x128xf32>
        %123 = vector.shape_cast %122 : vector<2x128xf32> to vector<1x2x128xf32>
        %cst_46 = arith.constant dense<0.000000e+00> : vector<1xf32>
        %124 = vector.multi_reduction <add>, %123, %cst_46 [1, 2] : vector<1x2x128xf32> to vector<1xf32>
        %125 = vector.shape_cast %124 : vector<1xf32> to vector<1x1x1xf32>
        %126 = vector.extract %125[0, 0, 0] : f32 from vector<1x1x1xf32>
        %127 = arith.mulf %cst_17, %126 : f32
        %cst_47 = arith.constant 1.000000e+00 : f32
        %128 = arith.subf %cst_47, %127 : f32
        %c1_i32_48 = arith.constant 1 : i32
        %129 = arith.addi %arg4, %c1_i32_48 : i32
        scf.yield %129, %100, %104, %116, %128 : i32, f32, f32, f32, f32
      }
      %c0_i32_34 = arith.constant 0 : i32
      %cst_35 = arith.constant 0.000000e+00 : f32
      %c0_i32_36 = arith.constant 0 : i32
      %87:5 = scf.while (%arg4 = %c0_i32_34, %arg5 = %86#1, %arg6 = %86#2, %arg7 = %cst_35, %arg8 = %c0_i32_36) : (i32, f32, f32, f32, i32) -> (i32, f32, f32, f32, i32) {
        %c16_i32 = arith.constant 16 : i32
        %92 = arith.cmpi slt, %arg4, %c16_i32 : i32
        %c0_i32_38 = arith.constant 0 : i32
        %93 = arith.cmpi eq, %arg8, %c0_i32_38 : i32
        %94 = arith.andi %92, %93 : i1
        scf.condition(%94) %arg4, %arg5, %arg6, %arg7, %arg8 : i32, f32, f32, f32, i32
      } do {
      ^bb0(%arg4: i32, %arg5: f32, %arg6: f32, %arg7: f32, %arg8: i32):
        %92 = arith.subf %arg6, %arg5 : f32
        %cst_38 = arith.constant 9.000000e+00 : f32
        %93 = arith.divf %92, %cst_38 : f32
        %cst_39 = arith.constant 1.000000e+00 : f32
        %94 = arith.mulf %93, %cst_39 : f32
        %95 = arith.addf %arg5, %94 : f32
        %96 = arith.mulf %95, %cst_14 : f32
        %97 = arith.subf %15, %96 : f32
        %98 = arith.minimumf %97, %cst_15 : f32
        %99 = math.exp %98 : f32
        %100 = vector.broadcast %99 : f32 to vector<2x128xf32>
        %101 = arith.mulf %18, %100 : vector<2x128xf32>
        %102 = vector.broadcast %cst_16 : f32 to vector<2x128xf32>
        %103 = arith.minimumf %101, %102 : vector<2x128xf32>
        %104 = vector.shape_cast %103 : vector<2x128xf32> to vector<1x2x128xf32>
        %cst_40 = arith.constant dense<0.000000e+00> : vector<1xf32>
        %105 = vector.multi_reduction <add>, %104, %cst_40 [1, 2] : vector<1x2x128xf32> to vector<1xf32>
        %106 = vector.shape_cast %105 : vector<1xf32> to vector<1x1x1xf32>
        %107 = vector.extract %106[0, 0, 0] : f32 from vector<1x1x1xf32>
        %108 = arith.mulf %cst_17, %107 : f32
        %cst_41 = arith.constant 1.000000e+00 : f32
        %109 = arith.subf %cst_41, %108 : f32
        %cst_42 = arith.constant 2.000000e+00 : f32
        %110 = arith.mulf %93, %cst_42 : f32
        %111 = arith.addf %arg5, %110 : f32
        %112 = arith.mulf %111, %cst_14 : f32
        %113 = arith.subf %15, %112 : f32
        %114 = arith.minimumf %113, %cst_15 : f32
        %115 = math.exp %114 : f32
        %116 = vector.broadcast %115 : f32 to vector<2x128xf32>
        %117 = arith.mulf %18, %116 : vector<2x128xf32>
        %118 = vector.broadcast %cst_16 : f32 to vector<2x128xf32>
        %119 = arith.minimumf %117, %118 : vector<2x128xf32>
        %120 = vector.shape_cast %119 : vector<2x128xf32> to vector<1x2x128xf32>
        %cst_43 = arith.constant dense<0.000000e+00> : vector<1xf32>
        %121 = vector.multi_reduction <add>, %120, %cst_43 [1, 2] : vector<1x2x128xf32> to vector<1xf32>
        %122 = vector.shape_cast %121 : vector<1xf32> to vector<1x1x1xf32>
        %123 = vector.extract %122[0, 0, 0] : f32 from vector<1x1x1xf32>
        %124 = arith.mulf %cst_17, %123 : f32
        %cst_44 = arith.constant 1.000000e+00 : f32
        %125 = arith.subf %cst_44, %124 : f32
        %cst_45 = arith.constant 3.000000e+00 : f32
        %126 = arith.mulf %93, %cst_45 : f32
        %127 = arith.addf %arg5, %126 : f32
        %128 = arith.mulf %127, %cst_14 : f32
        %129 = arith.subf %15, %128 : f32
        %130 = arith.minimumf %129, %cst_15 : f32
        %131 = math.exp %130 : f32
        %132 = vector.broadcast %131 : f32 to vector<2x128xf32>
        %133 = arith.mulf %18, %132 : vector<2x128xf32>
        %134 = vector.broadcast %cst_16 : f32 to vector<2x128xf32>
        %135 = arith.minimumf %133, %134 : vector<2x128xf32>
        %136 = vector.shape_cast %135 : vector<2x128xf32> to vector<1x2x128xf32>
        %cst_46 = arith.constant dense<0.000000e+00> : vector<1xf32>
        %137 = vector.multi_reduction <add>, %136, %cst_46 [1, 2] : vector<1x2x128xf32> to vector<1xf32>
        %138 = vector.shape_cast %137 : vector<1xf32> to vector<1x1x1xf32>
        %139 = vector.extract %138[0, 0, 0] : f32 from vector<1x1x1xf32>
        %140 = arith.mulf %cst_17, %139 : f32
        %cst_47 = arith.constant 1.000000e+00 : f32
        %141 = arith.subf %cst_47, %140 : f32
        %cst_48 = arith.constant 4.000000e+00 : f32
        %142 = arith.mulf %93, %cst_48 : f32
        %143 = arith.addf %arg5, %142 : f32
        %144 = arith.mulf %143, %cst_14 : f32
        %145 = arith.subf %15, %144 : f32
        %146 = arith.minimumf %145, %cst_15 : f32
        %147 = math.exp %146 : f32
        %148 = vector.broadcast %147 : f32 to vector<2x128xf32>
        %149 = arith.mulf %18, %148 : vector<2x128xf32>
        %150 = vector.broadcast %cst_16 : f32 to vector<2x128xf32>
        %151 = arith.minimumf %149, %150 : vector<2x128xf32>
        %152 = vector.shape_cast %151 : vector<2x128xf32> to vector<1x2x128xf32>
        %cst_49 = arith.constant dense<0.000000e+00> : vector<1xf32>
        %153 = vector.multi_reduction <add>, %152, %cst_49 [1, 2] : vector<1x2x128xf32> to vector<1xf32>
        %154 = vector.shape_cast %153 : vector<1xf32> to vector<1x1x1xf32>
        %155 = vector.extract %154[0, 0, 0] : f32 from vector<1x1x1xf32>
        %156 = arith.mulf %cst_17, %155 : f32
        %cst_50 = arith.constant 1.000000e+00 : f32
        %157 = arith.subf %cst_50, %156 : f32
        %cst_51 = arith.constant 5.000000e+00 : f32
        %158 = arith.mulf %93, %cst_51 : f32
        %159 = arith.addf %arg5, %158 : f32
        %160 = arith.mulf %159, %cst_14 : f32
        %161 = arith.subf %15, %160 : f32
        %162 = arith.minimumf %161, %cst_15 : f32
        %163 = math.exp %162 : f32
        %164 = vector.broadcast %163 : f32 to vector<2x128xf32>
        %165 = arith.mulf %18, %164 : vector<2x128xf32>
        %166 = vector.broadcast %cst_16 : f32 to vector<2x128xf32>
        %167 = arith.minimumf %165, %166 : vector<2x128xf32>
        %168 = vector.shape_cast %167 : vector<2x128xf32> to vector<1x2x128xf32>
        %cst_52 = arith.constant dense<0.000000e+00> : vector<1xf32>
        %169 = vector.multi_reduction <add>, %168, %cst_52 [1, 2] : vector<1x2x128xf32> to vector<1xf32>
        %170 = vector.shape_cast %169 : vector<1xf32> to vector<1x1x1xf32>
        %171 = vector.extract %170[0, 0, 0] : f32 from vector<1x1x1xf32>
        %172 = arith.mulf %cst_17, %171 : f32
        %cst_53 = arith.constant 1.000000e+00 : f32
        %173 = arith.subf %cst_53, %172 : f32
        %cst_54 = arith.constant 6.000000e+00 : f32
        %174 = arith.mulf %93, %cst_54 : f32
        %175 = arith.addf %arg5, %174 : f32
        %176 = arith.mulf %175, %cst_14 : f32
        %177 = arith.subf %15, %176 : f32
        %178 = arith.minimumf %177, %cst_15 : f32
        %179 = math.exp %178 : f32
        %180 = vector.broadcast %179 : f32 to vector<2x128xf32>
        %181 = arith.mulf %18, %180 : vector<2x128xf32>
        %182 = vector.broadcast %cst_16 : f32 to vector<2x128xf32>
        %183 = arith.minimumf %181, %182 : vector<2x128xf32>
        %184 = vector.shape_cast %183 : vector<2x128xf32> to vector<1x2x128xf32>
        %cst_55 = arith.constant dense<0.000000e+00> : vector<1xf32>
        %185 = vector.multi_reduction <add>, %184, %cst_55 [1, 2] : vector<1x2x128xf32> to vector<1xf32>
        %186 = vector.shape_cast %185 : vector<1xf32> to vector<1x1x1xf32>
        %187 = vector.extract %186[0, 0, 0] : f32 from vector<1x1x1xf32>
        %188 = arith.mulf %cst_17, %187 : f32
        %cst_56 = arith.constant 1.000000e+00 : f32
        %189 = arith.subf %cst_56, %188 : f32
        %cst_57 = arith.constant 7.000000e+00 : f32
        %190 = arith.mulf %93, %cst_57 : f32
        %191 = arith.addf %arg5, %190 : f32
        %192 = arith.mulf %191, %cst_14 : f32
        %193 = arith.subf %15, %192 : f32
        %194 = arith.minimumf %193, %cst_15 : f32
        %195 = math.exp %194 : f32
        %196 = vector.broadcast %195 : f32 to vector<2x128xf32>
        %197 = arith.mulf %18, %196 : vector<2x128xf32>
        %198 = vector.broadcast %cst_16 : f32 to vector<2x128xf32>
        %199 = arith.minimumf %197, %198 : vector<2x128xf32>
        %200 = vector.shape_cast %199 : vector<2x128xf32> to vector<1x2x128xf32>
        %cst_58 = arith.constant dense<0.000000e+00> : vector<1xf32>
        %201 = vector.multi_reduction <add>, %200, %cst_58 [1, 2] : vector<1x2x128xf32> to vector<1xf32>
        %202 = vector.shape_cast %201 : vector<1xf32> to vector<1x1x1xf32>
        %203 = vector.extract %202[0, 0, 0] : f32 from vector<1x1x1xf32>
        %204 = arith.mulf %cst_17, %203 : f32
        %cst_59 = arith.constant 1.000000e+00 : f32
        %205 = arith.subf %cst_59, %204 : f32
        %cst_60 = arith.constant 8.000000e+00 : f32
        %206 = arith.mulf %93, %cst_60 : f32
        %207 = arith.addf %arg5, %206 : f32
        %208 = arith.mulf %207, %cst_14 : f32
        %209 = arith.subf %15, %208 : f32
        %210 = arith.minimumf %209, %cst_15 : f32
        %211 = math.exp %210 : f32
        %212 = vector.broadcast %211 : f32 to vector<2x128xf32>
        %213 = arith.mulf %18, %212 : vector<2x128xf32>
        %214 = vector.broadcast %cst_16 : f32 to vector<2x128xf32>
        %215 = arith.minimumf %213, %214 : vector<2x128xf32>
        %216 = vector.shape_cast %215 : vector<2x128xf32> to vector<1x2x128xf32>
        %cst_61 = arith.constant dense<0.000000e+00> : vector<1xf32>
        %217 = vector.multi_reduction <add>, %216, %cst_61 [1, 2] : vector<1x2x128xf32> to vector<1xf32>
        %218 = vector.shape_cast %217 : vector<1xf32> to vector<1x1x1xf32>
        %219 = vector.extract %218[0, 0, 0] : f32 from vector<1x1x1xf32>
        %220 = arith.mulf %cst_17, %219 : f32
        %cst_62 = arith.constant 1.000000e+00 : f32
        %221 = arith.subf %cst_62, %220 : f32
        %cst_63 = arith.constant 0.000000e+00 : f32
        %222 = arith.cmpf olt, %109, %cst_63 : f32
        %cst_64 = arith.constant 1.000000e+00 : f32
        %cst_65 = arith.constant 0.000000e+00 : f32
        %223 = arith.select %222, %cst_64, %cst_65 : f32
        %cst_66 = arith.constant 0.000000e+00 : f32
        %224 = arith.addf %cst_66, %223 : f32
        %cst_67 = arith.constant 0.000000e+00 : f32
        %225 = arith.cmpf olt, %125, %cst_67 : f32
        %cst_68 = arith.constant 1.000000e+00 : f32
        %cst_69 = arith.constant 0.000000e+00 : f32
        %226 = arith.select %225, %cst_68, %cst_69 : f32
        %227 = arith.addf %224, %226 : f32
        %cst_70 = arith.constant 0.000000e+00 : f32
        %228 = arith.cmpf olt, %141, %cst_70 : f32
        %cst_71 = arith.constant 1.000000e+00 : f32
        %cst_72 = arith.constant 0.000000e+00 : f32
        %229 = arith.select %228, %cst_71, %cst_72 : f32
        %230 = arith.addf %227, %229 : f32
        %cst_73 = arith.constant 0.000000e+00 : f32
        %231 = arith.cmpf olt, %157, %cst_73 : f32
        %cst_74 = arith.constant 1.000000e+00 : f32
        %cst_75 = arith.constant 0.000000e+00 : f32
        %232 = arith.select %231, %cst_74, %cst_75 : f32
        %233 = arith.addf %230, %232 : f32
        %cst_76 = arith.constant 0.000000e+00 : f32
        %234 = arith.cmpf olt, %173, %cst_76 : f32
        %cst_77 = arith.constant 1.000000e+00 : f32
        %cst_78 = arith.constant 0.000000e+00 : f32
        %235 = arith.select %234, %cst_77, %cst_78 : f32
        %236 = arith.addf %233, %235 : f32
        %cst_79 = arith.constant 0.000000e+00 : f32
        %237 = arith.cmpf olt, %189, %cst_79 : f32
        %cst_80 = arith.constant 1.000000e+00 : f32
        %cst_81 = arith.constant 0.000000e+00 : f32
        %238 = arith.select %237, %cst_80, %cst_81 : f32
        %239 = arith.addf %236, %238 : f32
        %cst_82 = arith.constant 0.000000e+00 : f32
        %240 = arith.cmpf olt, %205, %cst_82 : f32
        %cst_83 = arith.constant 1.000000e+00 : f32
        %cst_84 = arith.constant 0.000000e+00 : f32
        %241 = arith.select %240, %cst_83, %cst_84 : f32
        %242 = arith.addf %239, %241 : f32
        %cst_85 = arith.constant 0.000000e+00 : f32
        %243 = arith.cmpf olt, %221, %cst_85 : f32
        %cst_86 = arith.constant 1.000000e+00 : f32
        %cst_87 = arith.constant 0.000000e+00 : f32
        %244 = arith.select %243, %cst_86, %cst_87 : f32
        %245 = arith.addf %242, %244 : f32
        %246 = arith.mulf %93, %245 : f32
        %247 = arith.addf %arg5, %246 : f32
        %cst_88 = arith.constant 1.000000e+00 : f32
        %248 = arith.addf %245, %cst_88 : f32
        %249 = arith.mulf %93, %248 : f32
        %250 = arith.addf %arg5, %249 : f32
        %251 = math.absf %109 : f32
        %252 = arith.addf %arg5, %93 : f32
        %cst_89 = arith.constant 2.000000e+00 : f32
        %253 = arith.mulf %93, %cst_89 : f32
        %254 = arith.addf %arg5, %253 : f32
        %255 = math.absf %125 : f32
        %256 = arith.cmpf olt, %255, %251 : f32
        %257 = arith.select %256, %255, %251 : f32
        %258 = arith.select %256, %254, %252 : f32
        %cst_90 = arith.constant 3.000000e+00 : f32
        %259 = arith.mulf %93, %cst_90 : f32
        %260 = arith.addf %arg5, %259 : f32
        %261 = math.absf %141 : f32
        %262 = arith.cmpf olt, %261, %257 : f32
        %263 = arith.select %262, %261, %257 : f32
        %264 = arith.select %262, %260, %258 : f32
        %cst_91 = arith.constant 4.000000e+00 : f32
        %265 = arith.mulf %93, %cst_91 : f32
        %266 = arith.addf %arg5, %265 : f32
        %267 = math.absf %157 : f32
        %268 = arith.cmpf olt, %267, %263 : f32
        %269 = arith.select %268, %267, %263 : f32
        %270 = arith.select %268, %266, %264 : f32
        %cst_92 = arith.constant 5.000000e+00 : f32
        %271 = arith.mulf %93, %cst_92 : f32
        %272 = arith.addf %arg5, %271 : f32
        %273 = math.absf %173 : f32
        %274 = arith.cmpf olt, %273, %269 : f32
        %275 = arith.select %274, %273, %269 : f32
        %276 = arith.select %274, %272, %270 : f32
        %cst_93 = arith.constant 6.000000e+00 : f32
        %277 = arith.mulf %93, %cst_93 : f32
        %278 = arith.addf %arg5, %277 : f32
        %279 = math.absf %189 : f32
        %280 = arith.cmpf olt, %279, %275 : f32
        %281 = arith.select %280, %279, %275 : f32
        %282 = arith.select %280, %278, %276 : f32
        %cst_94 = arith.constant 7.000000e+00 : f32
        %283 = arith.mulf %93, %cst_94 : f32
        %284 = arith.addf %arg5, %283 : f32
        %285 = math.absf %205 : f32
        %286 = arith.cmpf olt, %285, %281 : f32
        %287 = arith.select %286, %285, %281 : f32
        %288 = arith.select %286, %284, %282 : f32
        %cst_95 = arith.constant 8.000000e+00 : f32
        %289 = arith.mulf %93, %cst_95 : f32
        %290 = arith.addf %arg5, %289 : f32
        %291 = math.absf %221 : f32
        %292 = arith.cmpf olt, %291, %287 : f32
        %293 = arith.select %292, %291, %287 : f32
        %294 = arith.select %292, %290, %288 : f32
        %295 = arith.cmpf ole, %293, %cst_19 : f32
        %c1_i32_96 = arith.constant 1 : i32
        %296 = arith.addi %arg4, %c1_i32_96 : i32
        %297 = arith.select %295, %294, %arg7 : f32
        %c1_i32_97 = arith.constant 1 : i32
        %298 = arith.select %295, %c1_i32_97, %arg8 : i32
        scf.yield %296, %247, %250, %297, %298 : i32, f32, f32, f32, i32
      }
      %c1_i32 = arith.constant 1 : i32
      %88 = arith.cmpi eq, %87#4, %c1_i32 : i32
      %89 = arith.addf %87#1, %87#2 : f32
      %cst_37 = arith.constant 5.000000e-01 : f32
      %90 = arith.mulf %cst_37, %89 : f32
      %91 = arith.select %88, %87#3, %90 : f32
      scf.yield %91 : f32
    }
    %cst_20 = arith.constant 2.000000e+00 : f32
    %47 = arith.mulf %46, %cst_20 : f32
    %48 = vector.broadcast %47 : f32 to vector<2x128xf32>
    %49 = arith.subf %11, %48 : vector<2x128xf32>
    %cst_21 = arith.constant 1.20397282 : f32
    %50 = vector.broadcast %cst_21 : f32 to vector<2x128xf32>
    %51 = arith.minimumf %49, %50 : vector<2x128xf32>
    %52 = math.exp %51 : vector<2x128xf32>
    %cst_22 = arith.constant 3.906250e-03 : f32
    %53 = vector.broadcast %cst_22 : f32 to vector<2x128xf32>
    %54 = arith.mulf %52, %53 : vector<2x128xf32>
    %cst_23 = arith.constant 5.54517746 : f32
    %55 = vector.broadcast %cst_23 : f32 to vector<2x128xf32>
    %56 = arith.subf %51, %55 : vector<2x128xf32>
    %57 = arith.mulf %54, %56 : vector<2x128xf32>
    %58 = vector.shape_cast %57 : vector<2x128xf32> to vector<1x2x128xf32>
    %cst_24 = arith.constant dense<0.000000e+00> : vector<1xf32>
    %59 = vector.multi_reduction <add>, %58, %cst_24 [1, 2] : vector<1x2x128xf32> to vector<1xf32>
    %60 = vector.shape_cast %59 : vector<1xf32> to vector<1x1x1xf32>
    %61 = vector.extract %60[0, 0, 0] : f32 from vector<1x1x1xf32>
    %cst_25 = arith.constant 5.54517746 : f32
    %62 = arith.addf %cst_25, %61 : f32
    %63 = arith.mulf %54, %11 : vector<2x128xf32>
    %64 = vector.shape_cast %63 : vector<2x128xf32> to vector<1x2x128xf32>
    %cst_26 = arith.constant dense<0.000000e+00> : vector<1xf32>
    %65 = vector.multi_reduction <add>, %64, %cst_26 [1, 2] : vector<1x2x128xf32> to vector<1xf32>
    %66 = vector.shape_cast %65 : vector<1xf32> to vector<1x1x1xf32>
    %67 = vector.extract %66[0, 0, 0] : f32 from vector<1x1x1xf32>
    %cst_27 = arith.constant 5.000000e-01 : f32
    %68 = arith.mulf %cst_27, %67 : f32
    %cst_28 = arith.constant 5.000000e-01 : f32
    %69 = arith.mulf %cst_28, %62 : f32
    %70 = arith.subf %68, %69 : f32
    %c0_29 = arith.constant 0 : index
    %c0_30 = arith.constant 0 : index
    %71 = memref.load %arg2[%c0_29, %c0_30] : memref<1x1xf32, #tpu.memory_space<smem>>
    memref.store %70, %arg2[%c0_29, %c0_30] : memref<1x1xf32, #tpu.memory_space<smem>>
    return
  }
  func.func @transform_1(%arg0: i32) -> (i32, i32) {
    %c0_i32 = arith.constant 0 : i32
    %c0_i32_0 = arith.constant 0 : i32
    %c0_i32_1 = arith.constant 0 : i32
    return %c0_i32, %c0_i32_0 : i32, i32
  }
}

</mosaic_0001>

<bundles_post_ra>
// kernel: robust_loss.1
= control target key start
LH: loop header
LB: loop body
LE: loop exit
PB: predicated region body
PF: predicated region fallthrough
CT: control target
= control target key end

     0   :  { %6 = vsyncpa [#allocation4], 0  ;;  %s1243_s0 = inlined_call_operand.vmem [shape: f32[2,128], index: 0, kind: input, shape index: {}]   ;;  %s1244_s1 = inlined_call_operand.hbm [shape: f32[1,1], index: 1, kind: output, shape index: {}]  }
   0x1   :  { %v24_v0 = vld [vmem:[%s1243_s0] sm:$0x3] }
   0x2   :  { %25 = vst [vmem:[#allocation2] sm:$0x3] %v24_v0 }
   0x3   :  { %50 = vsyncadd [#allocation5], 32 }
   0x4   :  { %840 = dma.done.wait [#allocation5], 32 }
   0x5   :  { %841 = vsyncadd [#allocation5], 4294967264  ;;  %v54_v1 = vlaneseq  ;;  %vm64_vm0 = vcmask 1041408   ;;  %s896_s16 = smov 80.0  }
   0x7   :  { %v55_v2 = vshrl.u32 %v54_v1, 7  ;;  %v58_v3 = vand.u32 127, %v54_v1 }
   0x9   :  { %v61_v4 = vld [vmem:[#allocation2] sm:$0x3]  ;;  %v56_v5 = vmul.u32 128, %v55_v2 }
   0xa   :  { %v62_v6 = vmul.f32 2.0, %v61_v4 }
   0xb   :  { %v59_v7 = vadd.s32 %v58_v3, %v56_v5 }
   0xd   :  { %vm60_vm1 = vcmp.lt.s32.totalorder %v59_v7, 256 }
   0xe   :  { %v913_v8 = vsel %vm60_vm1, %v62_v6, -1e+30 }
   0xf   :  { %v65_v9 = vsel %vm64_vm0, %v913_v8, -inf }
  0x10   :  { %66 = vmax.xlane.f32.xlu0 %v65_v9 }
  0x9d   :  { %v67_v10 = vpop.xlane.xlu0 %66 }
  0x9e   :  { %v68_v11 = vrot.slane %v67_v10, 4 }
  0xa0   :  { %v69_v12 = vmax.f32 %v67_v10, %v68_v11 }
  0xa2   :  { %v70_v13 = vrot.slane %v69_v12, 2 }
  0xa4   :  { %v71_v14 = vmax.f32 %v69_v12, %v70_v13 }
  0xa6   :  { %v72_v15 = vrot.slane %v71_v14, 1 }
  0xa8   :  { %v73_v16 = vmax.f32 %v71_v14, %v72_v15 }
  0xaa   :  { %586 = vpush %v73_v16 }
  0xdb   :  { %s917_s0 = spop %586 }
  0xdc   :  { %v75_v17 = vstv %s917_s0  ;;  %s921_s8 = smul.f32 0.5, %s917_s0   ;;  %s583_s10 = sadd.f32 -5.5451775, %s917_s0 }
  0xdd   :  { %v76_v18 = vsub.f32 %v913_v8, %v75_v17 }
  0xdf   :  { %v77_v19 = vmul.f32 1.442695, %v76_v18 }
  0xe1   :  { %748 = vpow2.f32 %v77_v19 }
  0xeb   :  { %v924_v20 = vpop.eup %748 }
  0xec   :  { %v80_v21 = vsel %vm64_vm0, %v924_v20, 0.0 }
  0xed   :  { %81 = vadd.xlane.f32.xlu0 %v80_v21 }
 0x17a   :  { %v82_v22 = vpop.xlane.xlu0 %81 }
 0x17b   :  { %v83_v23 = vrot.slane %v82_v22, 4 }
 0x17d   :  { %v84_v24 = vadd.f32 %v83_v23, %v82_v22 }
 0x17f   :  { %v85_v25 = vrot.slane %v84_v24, 2 }
 0x181   :  { %v86_v26 = vadd.f32 %v85_v25, %v84_v24 }
 0x183   :  { %v87_v27 = vrot.slane %v86_v26, 1 }
 0x185   :  { %v88_v28 = vadd.f32 %v87_v27, %v86_v26 }
 0x187   :  { %588 = vpush %v88_v28 }
 0x1b8   :  { %s589_s9 = spop %588 }
 0x1b9   :  { %v90_v29 = vstv %s589_s9 }
 0x1ba   :  { %750 = vlog2.f32 %v90_v29 }
 0x1c4   :  { %v751_v30 = vpop.eup %750 }
 0x1c5   :  { %v92_v31 = vmul.f32 0.6931472, %v751_v30 }
 0x1c7   :  { %590 = vpush %v92_v31 }
 0x1f8   :  { %s591_s11 = spop %590 }
 0x1f9   :  { %s94_s12 = sadd.f32 %s591_s11, %s583_s10 }
 0x1fb   :  { %s929_s13 = smul.f32 0.5, %s94_s12  }
 0x1fd   :  { %s97_s14 = smul.f32 2.0, %s929_s13  ;;  %s1245_s23 = smov %s929_s13 }
 0x1ff   :  { %s98_s15 = ssub.f32 %s917_s0, %s97_s14 }
 0x201   :  { %s99_s17 = smin.f32 %s896_s16, %s98_s15 }
 0x202   :  { %v100_v32 = vstv %s99_s17 }
 0x203   :  { %v101_v33 = vmul.f32 1.442695, %v100_v32 }
 0x205   :  { %752 = vpow2.f32 %v101_v33 }
 0x20f   :  { %v753_v34 = vpop.eup %752 }
 0x210   :  { %592 = vpush %v753_v34 }
 0x241   :  { %s593_s18 = spop %592 }
 0x242   :  { %v104_v35 = vstv %s593_s18 }
 0x243   :  { %v105_v36 = vmul.f32 %v924_v20, %v104_v35 }
 0x245   :  { %v106_v37 = vmin.f32 %v105_v36, 3.3333333 }
 0x247   :  { %v107_v38 = vsel %vm64_vm0, %v106_v37, 0.0 }
 0x248   :  { %108 = vadd.xlane.f32.xlu1 %v107_v38 }
 0x2d5   :  { %v109_v39 = vpop.xlane.xlu1 %108 }
 0x2d6   :  { %v110_v40 = vrot.slane %v109_v39, 4 }
 0x2d8   :  { %v111_v41 = vadd.f32 %v110_v40, %v109_v39 }
 0x2da   :  { %v112_v42 = vrot.slane %v111_v41, 2 }
 0x2dc   :  { %v113_v43 = vadd.f32 %v112_v42, %v111_v41 }
 0x2de   :  { %v114_v44 = vrot.slane %v113_v43, 1 }
 0x2e0   :  { %v115_v45 = vadd.f32 %v114_v44, %v113_v43 }
 0x2e2   :  { %594 = vpush %v115_v45 }
 0x313   :  { %s595_s19 = spop %594 }
 0x314   :  { %s117_s20 = smul.f32 0.00390625, %s595_s19 }
 0x316   :  { %s935_s21 = ssub.f32 1.0, %s117_s20  }
 0x318   :  { %s119_s22 = sand.u32 2147483647, %s935_s21 }
 0x319   :  { %p120_p0 = scmp.le.f32.partialorder %s119_s22, 0.0001 }
 0x31a   :  { %s127_s24 = smul.f32 (!%p120_p0), 2.0, %s921_s8  ;;  %s897_s26 = smov (!%p120_p0), 80.0  }
 0x31b   :  { %126 = sbr.rel (%p120_p0) target bundleno = 3135 (0xc3f), region = 40  ;;  %p549_p1 = scmp.gt.f32.partialorder (!%p120_p0), %s935_s21, 0.0 }
 0x31c   :  { %s128_s25 = ssub.f32 (!%p120_p0), %s917_s0, %s127_s24  ;;  %s1246_s3 = smov (!%p120_p0), %s921_s8 }
 0x31d   :  { %s1247_s4 = smov (!%p120_p0), %s929_s13 }
 0x31e   :  { %s129_s27 = smin.f32 (!%p120_p0), %s897_s26, %s128_s25 }
 0x31f   :  { %v130_v46 = vstv (!%p120_p0), %s129_s27 }
 0x320   :  { %v131_v47 = vmul.f32 (!%p120_p0), 1.442695, %v130_v46 }
 0x322   :  { %754 = vpow2.f32 %v131_v47 }
 0x32c   :  { %v755_v48 = vpop.eup %754 }
 0x32d   :  { %596 = vpush %v755_v48 }
 0x35e   :  { %s597_s28 = spop %596 }
 0x35f   :  { %v134_v49 = vstv %s597_s28 }
 0x360   :  { %v135_v50 = vmul.f32 %v924_v20, %v134_v49 }
 0x362   :  { %v136_v51 = vmin.f32 %v135_v50, 3.3333333 }
 0x364   :  { %v137_v52 = vsel %vm64_vm0, %v136_v51, 0.0 }
 0x365   :  { %138 = vadd.xlane.f32.xlu0 %v137_v52 }
 0x3f2   :  { %v139_v53 = vpop.xlane.xlu0 %138 }
 0x3f3   :  { %v140_v54 = vrot.slane %v139_v53, 4 }
 0x3f5   :  { %v141_v55 = vadd.f32 %v140_v54, %v139_v53 }
 0x3f7   :  { %v142_v56 = vrot.slane %v141_v55, 2 }
 0x3f9   :  { %v143_v57 = vadd.f32 %v142_v56, %v141_v55 }
 0x3fb   :  { %v144_v58 = vrot.slane %v143_v57, 1 }
 0x3fd   :  { %v145_v59 = vadd.f32 %v144_v58, %v143_v57 }
 0x3ff   :  { %598 = vpush %v145_v59 }
 0x430   :  { %s599_s29 = spop %598 }
 0x431   :  { %s147_s30 = smul.f32 0.00390625, %s599_s29 }
 0x433   :  { %s148_s2 = ssub.f32 1.0, %s147_s30  }
 0x435   :  { %p550_p2 = scmp.lt.f32.partialorder %s148_s2, 0.0 }
 0x437   :  { %p551_p3 = por %p550_p2, %p549_p1 }
 0x438   :  { %s963_s5 = smov (%p551_p3), 0  }
 0x439   :  { %553 = sbr.rel (!%p551_p3) target bundleno = 1343 (0x53f), region = 78 }
 0x440 LB: > { %s163_s6 = ssub.f32 %s854_s8, %s858_s13  ;;  %p164_p4 = scmp.gt.f32.partialorder %s850_s21, 0.0  ;;  %s862_s5 = sphi %s963_s5, %s1250_s5   ;;  %s858_s13 = sphi %s929_s13, %s1249_s13   ;;  %s854_s8 = sphi %s921_s8, %s1248_s8   ;;  %s850_s21 = sphi %s935_s21, %s190_s21   ;;  %s846_s2 = sphi %s148_s2, %s208_s2  }
 0x441   : > { %p169_p5 = scmp.lt.f32.partialorder %s846_s2, 0.0  ;;  %s209_s15 = sadd.s32 1, %s862_s5  }
 0x442   : > { %s166_s7 = smul.f32 2.0, %s163_s6  ;;  %p155_p6 = scmp.lt.s32.totalorder %s209_s15, 128 }
 0x443   : > { %s165_s9 = scalar_select %p164_p4, %s858_s13, %s854_s8 }
 0x444   : > { %s167_s10 = ssub.f32 %s858_s13, %s166_s7  ;;  %s1250_s5 = smov %s209_s15 }
 0x445   : > { %s171_s11 = sadd.f32 %s166_s7, %s165_s9 }
 0x446   : > { %s1263_s10 = smov (!%p164_p4, %s167_s10), %s858_s13 }
 0x447   : > { %s1265_s11 = smov (!%p169_p5, %s171_s11), %s165_s9  ;;  %s1267_s9 = smov (!%p169_p5, %s165_s9), %s1263_s10 }
 0x448   : > { %s191_s12 = smul.f32 2.0, %s1265_s11 }
 0x449   : > { %s173_s14 = smul.f32 2.0, %s1267_s9 }
 0x44a   : > { %v192_v60 = vstv %s191_s12 }
 0x44b   : > { %v174_v61 = vstv %s173_s14  ;;  %v193_v62 = vsub.f32 %v913_v8, %v192_v60 }
 0x44c   : > { %v175_v63 = vsub.f32 %v913_v8, %v174_v61 }
 0x44d   : > { %v194_v0 = vmin.f32 %v193_v62, 1.2039728 }
 0x44e   : > { %v176_v1 = vmin.f32 %v175_v63, 1.2039728 }
 0x44f   : > { %v195_v2 = vmul.f32 1.442695, %v194_v0 }
 0x450   : > { %v177_v3 = vmul.f32 1.442695, %v176_v1 }
 0x451   : > { %756 = vpow2.f32 %v195_v2 }
 0x452   : > { %758 = vpow2.f32 %v177_v3 }
 0x45b   : > { %v757_v4 = vpop.eup %756 }
 0x45c   : > { %v759_v5 = vpop.eup %758  ;;  %v197_v7 = vsel %vm64_vm0, %v757_v4, 0.0 }
 0x45d   : > { %v179_v6 = vsel %vm64_vm0, %v759_v5, 0.0 }
 0x45e   : > { %180 = vadd.xlane.f32.xlu0 %v179_v6 }
 0x462   : > { %198 = vadd.xlane.f32.xlu0 %v197_v7 }
 0x4eb   : > { %v181_v9 = vpop.xlane.xlu0 %180 }
 0x4ec   : > { %v182_v10 = vrot.slane %v181_v9, 4 }
 0x4ee   : > { %v183_v11 = vadd.f32 %v182_v10, %v181_v9 }
 0x4ef   : > { %v199_v12 = vpop.xlane.xlu0 %198 }
 0x4f0   : > { %v184_v13 = vrot.slane %v183_v11, 2  ;;  %v200_v14 = vrot.slane %v199_v12, 4 }
 0x4f2   : > { %v201_v15 = vadd.f32 %v200_v14, %v199_v12  ;;  %v185_v16 = vadd.f32 %v184_v13, %v183_v11 }
 0x4f4   : > { %v202_v17 = vrot.slane %v201_v15, 2  ;;  %v186_v18 = vrot.slane %v185_v16, 1 }
 0x4f6   : > { %v203_v19 = vadd.f32 %v202_v17, %v201_v15  ;;  %v187_v21 = vadd.f32 %v186_v18, %v185_v16 }
 0x4f8   : > { %600 = vpush %v187_v21  ;;  %v204_v22 = vrot.slane %v203_v19, 1 }
 0x4fa   : > { %v205_v23 = vadd.f32 %v204_v22, %v203_v19 }
 0x4fc   : > { %602 = vpush %v205_v23 }
 0x529   : > { %s601_s8 = spop %600 }
 0x52a   : > { %s189_s13 = smul.f32 0.00390625, %s601_s8  ;;  %s1248_s8 = smov %s1265_s11 }
 0x52c   : > { %s190_s21 = ssub.f32 1.0, %s189_s13   ;;  %s1249_s13 = smov %s1267_s9 }
 0x52d   : > { %s603_s16 = spop %602 }
 0x52e   : > { %s207_s17 = smul.f32 0.00390625, %s603_s16  ;;  %p156_p7 = scmp.gt.f32.partialorder %s190_s21, 0.0 }
 0x530   : > { %s208_s2 = ssub.f32 1.0, %s207_s17  }
 0x532   : > { %p157_p8 = scmp.lt.f32.partialorder %s208_s2, 0.0 }
 0x534   : > { %p158_p9 = por %p157_p8, %p156_p7 }
 0x536   : > { %p159_p10 = pnand %p158_p9, %p155_p6 }
 0x537   :  { %s1251_s3 = smov (%p159_p10), %s1265_s11  ;;  %s1252_s4 = smov (%p159_p10), %s1267_s9 }
 0x538   :  { %162 = sbr.rel (!%p159_p10) target bundleno = 1088 (0x440), region = 84 }
 0x53f PF:  { %s1007_s18 = smov 0   ;;  %s1009_s19 = smov 0.0   ;;  %s870_s4 = sphi %s1247_s4, %s1252_s4   ;;  %s866_s3 = sphi %s1246_s3, %s1251_s3  }
 0x540   :  { %s1015_s20 = smov 0  }
 0x541 LB: > { %s222_s21 = ssub.f32 %s882_s3, %s886_s4  ;;  %s898_s26 = smov 80.0   ;;  %s890_s20 = sphi %s1015_s20, %s1260_s20   ;;  %s886_s4 = sphi %s870_s4, %s1259_s4   ;;  %s882_s3 = sphi %s866_s3, %s1258_s3   ;;  %s878_s19 = sphi %s1009_s19, %s1257_s19   ;;  %s874_s18 = sphi %s1007_s18, %s1256_s18  }
 0x543   : > { %s1031_s22 = smul.f32 0.11111111, %s222_s21 }
 0x545   : > { %s1035_s23 = sadd.f32 %s886_s4, %s1031_s22  ;;  %s249_s29 = smul.f32 2.0, %s1031_s22 }
 0x546   : > { %s273_s9 = smul.f32 3.0, %s1031_s22 }
 0x547   : > { %s227_s24 = smul.f32 2.0, %s1035_s23  ;;  %s1044_s30 = sadd.f32 %s886_s4, %s249_s29 }
 0x548   : > { %s1053_s10 = sadd.f32 %s886_s4, %s273_s9 }
 0x549   : > { %s228_s25 = ssub.f32 %s917_s0, %s227_s24  ;;  %s251_s2 = smul.f32 2.0, %s1044_s30 }
 0x54a   : > { %s275_s11 = smul.f32 2.0, %s1053_s10 }
 0x54b   : > { %s229_s27 = smin.f32 %s898_s26, %s228_s25  ;;  %s252_s3 = ssub.f32 %s917_s0, %s251_s2 }
 0x54c   : > { %v230_v24 = vstv %s229_s27  ;;  %s276_s12 = ssub.f32 %s917_s0, %s275_s11 }
 0x54d   : > { %v231_v25 = vmul.f32 1.442695, %v230_v24  ;;  %s253_s5 = smin.f32 %s898_s26, %s252_s3  ;;  %s297_s3 = smul.f32 4.0, %s1031_s22 }
 0x54e   : > { %v254_v31 = vstv %s253_s5  ;;  %s277_s14 = smin.f32 %s898_s26, %s276_s12 }
 0x54f   : > { %760 = vpow2.f32 %v231_v25  ;;  %v255_v32 = vmul.f32 1.442695, %v254_v31  ;;  %v278_v45 = vstv %s277_s14  ;;  %s1076_s5 = sadd.f32 %s886_s4, %s297_s3 }
 0x550   : > { %v279_v46 = vmul.f32 1.442695, %v278_v45 }
 0x551   : > { %762 = vpow2.f32 %v255_v32 }
 0x552   : > { %764 = vpow2.f32 %v279_v46 }
 0x559   : > { %v761_v26 = vpop.eup %760 }
 0x55a   : > { %604 = vpush %v761_v26 }
 0x55b   : > { %v763_v39 = vpop.eup %762 }
 0x55c   : > { %v765_v53 = vpop.eup %764 }
 0x58b   : > { %s605_s28 = spop %604 }
 0x58c   : > { %v234_v27 = vstv %s605_s28 }
 0x58d   : > { %v235_v28 = vmul.f32 %v924_v20, %v234_v27 }
 0x58f   : > { %v236_v29 = vmin.f32 %v235_v28, 3.3333333 }
 0x591   : > { %v237_v30 = vsel %vm64_vm0, %v236_v29, 0.0 }
 0x592   : > { %238 = vadd.xlane.f32.xlu0 %v237_v30 }
 0x61f   : > { %v239_v33 = vpop.xlane.xlu0 %238 }
 0x620   : > { %v240_v34 = vrot.slane %v239_v33, 4 }
 0x622   : > { %v241_v35 = vadd.f32 %v240_v34, %v239_v33 }
 0x624   : > { %v242_v36 = vrot.slane %v241_v35, 2 }
 0x626   : > { %v243_v37 = vadd.f32 %v242_v36, %v241_v35 }
 0x628   : > { %v244_v38 = vrot.slane %v243_v37, 1 }
 0x62a   : > { %v245_v40 = vadd.f32 %v244_v38, %v243_v37 }
 0x62c   : > { %606 = vpush %v245_v40 }
 0x62d   : > { %608 = vpush %v763_v39 }
 0x65d   : > { %s607_s6 = spop %606 }
 0x65e   : > { %s609_s7 = spop %608  ;;  %s247_s15 = smul.f32 0.00390625, %s607_s6 }
 0x65f   : > { %v258_v41 = vstv %s609_s7  ;;  %s299_s6 = smul.f32 2.0, %s1076_s5 }
 0x660   : > { %v259_v42 = vmul.f32 %v924_v20, %v258_v41  ;;  %s248_s8 = ssub.f32 1.0, %s247_s15 }
 0x661   : > { %s300_s7 = ssub.f32 %s917_s0, %s299_s6 }
 0x662   : > { %v260_v43 = vmin.f32 %v259_v42, 3.3333333  ;;  %p417_p11 = scmp.lt.f32.partialorder %s248_s8, 0.0  ;;  %s446_s21 = sand.u32 2147483647, %s248_s8 }
 0x663   : > { %s301_s9 = smin.f32 %s898_s26, %s300_s7 }
 0x664   : > { %v261_v44 = vsel %vm64_vm0, %v260_v43, 0.0  ;;  %s1059_s25 = scalar_select %p417_p11, 1.0, 0.0  ;;  %v302_v59 = vstv %s301_s9 }
 0x665   : > { %262 = vadd.xlane.f32.xlu0 %v261_v44  ;;  %v303_v60 = vmul.f32 1.442695, %v302_v59 }
 0x667   : > { %766 = vpow2.f32 %v303_v60 }
 0x671   : > { %v767_v3 = vpop.eup %766 }
 0x6f2   : > { %v263_v47 = vpop.xlane.xlu0 %262 }
 0x6f3   : > { %v264_v48 = vrot.slane %v263_v47, 4 }
 0x6f5   : > { %v265_v49 = vadd.f32 %v264_v48, %v263_v47 }
 0x6f7   : > { %v266_v50 = vrot.slane %v265_v49, 2 }
 0x6f9   : > { %v267_v51 = vadd.f32 %v266_v50, %v265_v49 }
 0x6fb   : > { %v268_v52 = vrot.slane %v267_v51, 1 }
 0x6fd   : > { %v269_v54 = vadd.f32 %v268_v52, %v267_v51 }
 0x6ff   : > { %610 = vpush %v269_v54 }
 0x700   : > { %612 = vpush %v765_v53 }
 0x730   : > { %s611_s13 = spop %610 }
 0x731   : > { %s271_s16 = smul.f32 0.00390625, %s611_s13  ;;  %s613_s17 = spop %612 }
 0x732   : > { %v282_v55 = vstv %s613_s17  ;;  %s321_s17 = smul.f32 5.0, %s1031_s22 }
 0x733   : > { %s272_s24 = ssub.f32 1.0, %s271_s16  ;;  %v283_v56 = vmul.f32 %v924_v20, %v282_v55 }
 0x735   : > { %p420_p12 = scmp.lt.f32.partialorder %s272_s24, 0.0  ;;  %s447_s27 = sand.u32 2147483647, %s272_s24  ;;  %v284_v57 = vmin.f32 %v283_v56, 3.3333333 }
 0x736   : > { %p1061_p13 = scmp.lt.f32.partialorder %s447_s27, %s446_s21 }
 0x737   : > { %s1065_s29 = scalar_select %p420_p12, 1.0, 0.0  ;;  %v285_v58 = vsel %vm64_vm0, %v284_v57, 0.0 }
 0x738   : > { %s1269_s27 = smov (!%p1061_p13, %s447_s27), %s446_s21  ;;  %286 = vadd.xlane.f32.xlu1 %v285_v58  ;;  %s1271_s30 = smov (!%p1061_p13, %s1044_s30), %s1035_s23 }
 0x739   : > { %s422_s2 = sadd.f32 %s1065_s29, %s1059_s25 }
 0x73a   : > { %s1101_s21 = sadd.f32 %s886_s4, %s321_s17 }
 0x73c   : > { %s323_s23 = smul.f32 2.0, %s1101_s21 }
 0x73e   : > { %s324_s24 = ssub.f32 %s917_s0, %s323_s23 }
 0x740   : > { %s325_s28 = smin.f32 %s898_s26, %s324_s24 }
 0x741   : > { %v326_v10 = vstv %s325_s28 }
 0x742   : > { %v327_v11 = vmul.f32 1.442695, %v326_v10 }
 0x744   : > { %768 = vpow2.f32 %v327_v11 }
 0x74e   : > { %v769_v18 = vpop.eup %768 }
 0x7c5   : > { %v287_v61 = vpop.xlane.xlu1 %286 }
 0x7c6   : > { %v288_v62 = vrot.slane %v287_v61, 4 }
 0x7c8   : > { %v289_v63 = vadd.f32 %v288_v62, %v287_v61 }
 0x7ca   : > { %v290_v0 = vrot.slane %v289_v63, 2 }
 0x7cc   : > { %v291_v1 = vadd.f32 %v290_v0, %v289_v63 }
 0x7ce   : > { %v292_v2 = vrot.slane %v291_v1, 1 }
 0x7d0   : > { %v293_v4 = vadd.f32 %v292_v2, %v291_v1 }
 0x7d2   : > { %614 = vpush %v293_v4 }
 0x7d3   : > { %616 = vpush %v767_v3 }
 0x803   : > { %s615_s11 = spop %614 }
 0x804   : > { %s295_s12 = smul.f32 0.00390625, %s615_s11  ;;  %s617_s14 = spop %616 }
 0x805   : > { %v306_v5 = vstv %s617_s14  ;;  %s345_s11 = smul.f32 6.0, %s1031_s22 }
 0x806   : > { %s296_s15 = ssub.f32 1.0, %s295_s12  ;;  %v307_v6 = vmul.f32 %v924_v20, %v306_v5 }
 0x807   : > { %s1128_s12 = sadd.f32 %s886_s4, %s345_s11 }
 0x808   : > { %p423_p0 = scmp.lt.f32.partialorder %s296_s15, 0.0  ;;  %s451_s8 = sand.u32 2147483647, %s296_s15  ;;  %v308_v7 = vmin.f32 %v307_v6, 3.3333333 }
 0x809   : > { %p452_p1 = scmp.lt.f32.partialorder %s451_s8, %s1269_s27  ;;  %s347_s14 = smul.f32 2.0, %s1128_s12 }
 0x80a   : > { %s424_s13 = scalar_select %p423_p0, 1.0, 0.0  ;;  %v309_v9 = vsel %vm64_vm0, %v308_v7, 0.0 }
 0x80b   : > { %s1273_s8 = smov (!%p452_p1, %s451_s8), %s1269_s27  ;;  %310 = vadd.xlane.f32.xlu1 %v309_v9  ;;  %s1275_s10 = smov (!%p452_p1, %s1053_s10), %s1271_s30 }
 0x80c   : > { %s1094_s16 = sadd.f32 %s424_s13, %s422_s2 }
 0x80d   : > { %s348_s15 = ssub.f32 %s917_s0, %s347_s14 }
 0x80f   : > { %s349_s13 = smin.f32 %s898_s26, %s348_s15 }
 0x810   : > { %v350_v25 = vstv %s349_s13 }
 0x811   : > { %v351_v26 = vmul.f32 1.442695, %v350_v25 }
 0x813   : > { %770 = vpow2.f32 %v351_v26 }
 0x81d   : > { %v771_v33 = vpop.eup %770 }
 0x898   : > { %v311_v12 = vpop.xlane.xlu1 %310 }
 0x899   : > { %v312_v13 = vrot.slane %v311_v12, 4 }
 0x89b   : > { %v313_v14 = vadd.f32 %v312_v13, %v311_v12 }
 0x89d   : > { %v314_v15 = vrot.slane %v313_v14, 2 }
 0x89f   : > { %v315_v16 = vadd.f32 %v314_v15, %v313_v14 }
 0x8a1   : > { %v316_v17 = vrot.slane %v315_v16, 1 }
 0x8a3   : > { %v317_v19 = vadd.f32 %v316_v17, %v315_v16 }
 0x8a5   : > { %618 = vpush %v317_v19 }
 0x8a6   : > { %620 = vpush %v769_v18 }
 0x8d6   : > { %s619_s30 = spop %618 }
 0x8d7   : > { %s319_s25 = smul.f32 0.00390625, %s619_s30  ;;  %s621_s27 = spop %620 }
 0x8d8   : > { %v330_v21 = vstv %s621_s27  ;;  %s369_s27 = smul.f32 7.0, %s1031_s22 }
 0x8d9   : > { %s320_s29 = ssub.f32 1.0, %s319_s25  ;;  %v331_v22 = vmul.f32 %v924_v20, %v330_v21 }
 0x8db   : > { %p426_p2 = scmp.lt.f32.partialorder %s320_s29, 0.0  ;;  %s455_s2 = sand.u32 2147483647, %s320_s29  ;;  %v332_v23 = vmin.f32 %v331_v22, 3.3333333 }
 0x8dc   : > { %p1108_p3 = scmp.lt.f32.partialorder %s455_s2, %s1273_s8  ;;  %s1154_s29 = sadd.f32 %s886_s4, %s369_s27 }
 0x8dd   : > { %s1112_s6 = scalar_select %p426_p2, 1.0, 0.0  ;;  %v333_v24 = vsel %vm64_vm0, %v332_v23, 0.0 }
 0x8de   : > { %s1277_s2 = smov (!%p1108_p3, %s455_s2), %s1273_s8  ;;  %334 = vadd.xlane.f32.xlu0 %v333_v24  ;;  %s371_s11 = smul.f32 2.0, %s1154_s29 }
 0x8df   : > { %s428_s7 = sadd.f32 %s1112_s6, %s1094_s16 }
 0x8e0   : > { %s458_s9 = scalar_select %p1108_p3, %s1076_s5, %s1275_s10 }
 0x8e1   : > { %s372_s14 = ssub.f32 %s917_s0, %s371_s11 }
 0x8e3   : > { %s373_s15 = smin.f32 %s898_s26, %s372_s14 }
 0x8e4   : > { %v374_v39 = vstv %s373_s15 }
 0x8e5   : > { %v375_v40 = vmul.f32 1.442695, %v374_v39 }
 0x8e7   : > { %772 = vpow2.f32 %v375_v40 }
 0x8f1   : > { %v773_v47 = vpop.eup %772 }
 0x96b   : > { %v335_v27 = vpop.xlane.xlu0 %334 }
 0x96c   : > { %v336_v28 = vrot.slane %v335_v27, 4 }
 0x96e   : > { %v337_v29 = vadd.f32 %v336_v28, %v335_v27 }
 0x970   : > { %v338_v30 = vrot.slane %v337_v29, 2 }
 0x972   : > { %v339_v31 = vadd.f32 %v338_v30, %v337_v29 }
 0x974   : > { %v340_v32 = vrot.slane %v339_v31, 1 }
 0x976   : > { %v341_v34 = vadd.f32 %v340_v32, %v339_v31 }
 0x978   : > { %622 = vpush %v341_v34 }
 0x979   : > { %624 = vpush %v771_v33 }
 0x9a9   : > { %s623_s8 = spop %622 }
 0x9aa   : > { %s343_s17 = smul.f32 0.00390625, %s623_s8  ;;  %s625_s23 = spop %624 }
 0x9ab   : > { %v354_v35 = vstv %s625_s23  ;;  %s393_s8 = smul.f32 8.0, %s1031_s22 }
 0x9ac   : > { %s344_s24 = ssub.f32 1.0, %s343_s17  ;;  %v355_v36 = vmul.f32 %v924_v20, %v354_v35 }
 0x9ad   : > { %s1181_s17 = sadd.f32 %s886_s4, %s393_s8 }
 0x9ae   : > { %p429_p4 = scmp.lt.f32.partialorder %s344_s24, 0.0  ;;  %s459_s28 = sand.u32 2147483647, %s344_s24  ;;  %v356_v37 = vmin.f32 %v355_v36, 3.3333333 }
 0x9af   : > { %p460_p5 = scmp.lt.f32.partialorder %s459_s28, %s1277_s2  ;;  %s395_s23 = smul.f32 2.0, %s1181_s17 }
 0x9b0   : > { %s430_s30 = scalar_select %p429_p4, 1.0, 0.0  ;;  %v357_v38 = vsel %vm64_vm0, %v356_v37, 0.0 }
 0x9b1   : > { %s1279_s28 = smov (!%p460_p5, %s459_s28), %s1277_s2  ;;  %358 = vadd.xlane.f32.xlu1 %v357_v38  ;;  %s1281_s21 = smov (!%p460_p5, %s1101_s21), %s458_s9 }
 0x9b2   : > { %s1142_s25 = sadd.f32 %s430_s30, %s428_s7 }
 0x9b3   : > { %s396_s24 = ssub.f32 %s917_s0, %s395_s23 }
 0x9b5   : > { %s397_s30 = smin.f32 %s898_s26, %s396_s24 }
 0x9b6   : > { %v398_v53 = vstv %s397_s30 }
 0x9b7   : > { %v399_v54 = vmul.f32 1.442695, %v398_v53 }
 0x9b9   : > { %774 = vpow2.f32 %v399_v54 }
 0x9c3   : > { %v775_v61 = vpop.eup %774 }
 0xa3e   : > { %v359_v41 = vpop.xlane.xlu1 %358 }
 0xa3f   : > { %v360_v42 = vrot.slane %v359_v41, 4 }
 0xa41   : > { %v361_v43 = vadd.f32 %v360_v42, %v359_v41 }
 0xa43   : > { %v362_v44 = vrot.slane %v361_v43, 2 }
 0xa45   : > { %v363_v45 = vadd.f32 %v362_v44, %v361_v43 }
 0xa47   : > { %v364_v46 = vrot.slane %v363_v45, 1 }
 0xa49   : > { %v365_v48 = vadd.f32 %v364_v46, %v363_v45 }
 0xa4b   : > { %626 = vpush %v365_v48 }
 0xa4c   : > { %628 = vpush %v773_v47 }
 0xa7c   : > { %s627_s10 = spop %626 }
 0xa7d   : > { %s367_s5 = smul.f32 0.00390625, %s627_s10  ;;  %s629_s16 = spop %628 }
 0xa7e   : > { %v378_v49 = vstv %s629_s16 }
 0xa7f   : > { %s368_s2 = ssub.f32 1.0, %s367_s5  ;;  %v379_v50 = vmul.f32 %v924_v20, %v378_v49  ;;  %s476_s5 = sadd.s32 1, %s890_s20  }
 0xa80   : > { %p216_p13 = scmp.lt.s32.totalorder %s476_s5, 16  ;;  %s1260_s20 = smov %s476_s5 }
 0xa81   : > { %p432_p6 = scmp.lt.f32.partialorder %s368_s2, 0.0  ;;  %s463_s3 = sand.u32 2147483647, %s368_s2  ;;  %v380_v51 = vmin.f32 %v379_v50, 3.3333333 }
 0xa82   : > { %p1161_p7 = scmp.lt.f32.partialorder %s463_s3, %s1279_s28 }
 0xa83   : > { %s1165_s7 = scalar_select %p432_p6, 1.0, 0.0  ;;  %v381_v52 = vsel %vm64_vm0, %v380_v51, 0.0 }
 0xa84   : > { %s1283_s3 = smov (!%p1161_p7, %s463_s3), %s1279_s28  ;;  %382 = vadd.xlane.f32.xlu0 %v381_v52 }
 0xa85   : > { %s434_s9 = sadd.f32 %s1165_s7, %s1142_s25 }
 0xa86   : > { %s466_s13 = scalar_select %p1161_p7, %s1128_s12, %s1281_s21 }
 0xb11   : > { %v383_v55 = vpop.xlane.xlu0 %382 }
 0xb12   : > { %v384_v56 = vrot.slane %v383_v55, 4 }
 0xb14   : > { %v385_v57 = vadd.f32 %v384_v56, %v383_v55 }
 0xb16   : > { %v386_v58 = vrot.slane %v385_v57, 2 }
 0xb18   : > { %v387_v59 = vadd.f32 %v386_v58, %v385_v57 }
 0xb1a   : > { %v388_v60 = vrot.slane %v387_v59, 1 }
 0xb1c   : > { %v389_v62 = vadd.f32 %v388_v60, %v387_v59 }
 0xb1e   : > { %630 = vpush %v389_v62 }
 0xb1f   : > { %632 = vpush %v775_v61 }
 0xb4f   : > { %s631_s26 = spop %630 }
 0xb50   : > { %s391_s28 = smul.f32 0.00390625, %s631_s26  ;;  %s633_s27 = spop %632 }
 0xb51   : > { %v402_v63 = vstv %s633_s27 }
 0xb52   : > { %s392_s11 = ssub.f32 1.0, %s391_s28  ;;  %v403_v0 = vmul.f32 %v924_v20, %v402_v63 }
 0xb54   : > { %p435_p8 = scmp.lt.f32.partialorder %s392_s11, 0.0  ;;  %s467_s14 = sand.u32 2147483647, %s392_s11  ;;  %v404_v1 = vmin.f32 %v403_v0, 3.3333333 }
 0xb55   : > { %p468_p9 = scmp.lt.f32.partialorder %s467_s14, %s1283_s3 }
 0xb56   : > { %s436_s15 = scalar_select %p435_p8, 1.0, 0.0  ;;  %v405_v2 = vsel %vm64_vm0, %v404_v1, 0.0 }
 0xb57   : > { %s1285_s29 = smov (!%p468_p9, %s1154_s29), %s466_s13  ;;  %406 = vadd.xlane.f32.xlu1 %v405_v2  ;;  %s1287_s14 = smov (!%p468_p9, %s467_s14), %s1283_s3 }
 0xb58   : > { %s437_s10 = sadd.f32 %s436_s15, %s434_s9 }
 0xbe4   : > { %v407_v3 = vpop.xlane.xlu1 %406 }
 0xbe5   : > { %v408_v4 = vrot.slane %v407_v3, 4 }
 0xbe7   : > { %v409_v5 = vadd.f32 %v408_v4, %v407_v3 }
 0xbe9   : > { %v410_v6 = vrot.slane %v409_v5, 2 }
 0xbeb   : > { %v411_v7 = vadd.f32 %v410_v6, %v409_v5 }
 0xbed   : > { %v412_v9 = vrot.slane %v411_v7, 1 }
 0xbef   : > { %v413_v10 = vadd.f32 %v412_v9, %v411_v7 }
 0xbf1   : > { %634 = vpush %v413_v10 }
 0xc22   : > { %s635_s21 = spop %634 }
 0xc23   : > { %s415_s12 = smul.f32 0.00390625, %s635_s21 }
 0xc25   : > { %s416_s25 = ssub.f32 1.0, %s415_s12 }
 0xc27   : > { %p438_p10 = scmp.lt.f32.partialorder %s416_s25, 0.0  ;;  %s471_s16 = sand.u32 2147483647, %s416_s25 }
 0xc28   : > { %p472_p11 = scmp.lt.f32.partialorder %s471_s16, %s1287_s14 }
 0xc29   : > { %s439_s2 = scalar_select %p438_p10, 1.0, 0.0 }
 0xc2a   : > { %s1289_s16 = smov (!%p472_p11, %s471_s16), %s1287_s14  ;;  %s1291_s17 = smov (!%p472_p11, %s1181_s17), %s1285_s29 }
 0xc2b   : > { %s440_s3 = sadd.f32 %s439_s2, %s437_s10  ;;  %p475_p12 = scmp.le.f32.partialorder %s1289_s16, 0.0001 }
 0xc2d   : > { %s441_s6 = smul.f32 %s440_s3, %s1031_s22  ;;  %s443_s7 = sadd.f32 1.0, %s440_s3 }
 0xc2e   : > { %s1293_s17 = smov (!%p475_p12, %s1291_s17), %s878_s19 }
 0xc2f   : > { %s442_s9 = sadd.f32 %s886_s4, %s441_s6   ;;  %s444_s13 = smul.f32 %s443_s7, %s1031_s22 }
 0xc30   : > { %s478_s23 = scalar_select %p475_p12, 1, %s874_s18  }
 0xc31   : > { %s445_s8 = sadd.f32 %s886_s4, %s444_s13   ;;  %s1257_s19 = smov %s1293_s17 }
 0xc32   : > { %p217_p0 = scmp.eq.s32.totalorder %s478_s23, 0  ;;  %s1256_s18 = smov %s478_s23 }
 0xc33   : > { %s1258_s3 = smov %s445_s8  ;;  %s1259_s4 = smov %s442_s9 }
 0xc34   : > { %p218_p1 = pnand %p217_p0, %p216_p13 }
 0xc35   :  { %p479_p2 = scmp.eq.s32.totalorder (%p218_p1), %s478_s23, 1  ;;  %s480_s22 = sadd.f32 (%p218_p1), %s445_s8, %s442_s9 }
 0xc36   :  { %221 = sbr.rel (!%p218_p1) target bundleno = 1345 (0x541), region = 95 }
 0xc37   :  { %s481_s29 = smul.f32 (%p218_p1), 0.5, %s480_s22 }
 0xc3d   :  { %s1295_s17 = smov (!%p479_p2, %s1293_s17), %s481_s29 }
 0xc3e   :  { %s1261_s23 = smov %s1295_s17 }
 0xc3f PF:  { %s484_s24 = smul.f32 2.0, %s894_s23  ;;  %s778_s28 = scalar_lea.hbm %s1244_s1, 16  ;;  %s894_s23 = sphi %s1245_s23, %s1261_s23  }
 0xc40   :  { %p779_p3 = scmp.ne.s32.totalorder %s1244_s1, %s778_s28  ;;  %p782_p4 = scmp.lt.u32.totalorder %s778_s28, %s1244_s1 }
 0xc41   :  { %v485_v11 = vstv %s484_s24 }
 0xc42   :  { %v486_v12 = vsub.f32 %v913_v8, %v485_v11  ;;  %p784_p5 = pnand %p782_p4, %p779_p3 }
 0xc44   :  { %v487_v13 = vmin.f32 %v486_v12, 1.2039728 }
 0xc46   :  { %v488_v14 = vmul.f32 1.442695, %v487_v13  ;;  %v585_v15 = vadd.f32 -5.5451775, %v487_v13 }
 0xc48   :  { %776 = vpow2.f32 %v488_v14 }
 0xc52   :  { %v777_v16 = vpop.eup %776 }
 0xc53   :  { %v490_v17 = vmul.f32 0.00390625, %v777_v16 }
 0xc55   :  { %v492_v20 = vmul.f32 %v585_v15, %v490_v17  ;;  %v504_v18 = vmul.f32 %v490_v17, %v913_v8 }
 0xc57   :  { %v493_v19 = vsel %vm64_vm0, %v492_v20, 0.0  ;;  %v505_v21 = vsel %vm64_vm0, %v504_v18, 0.0 }
 0xc58   :  { %494 = vadd.xlane.f32.xlu0 %v493_v19 }
 0xc5c   :  { %506 = vadd.xlane.f32.xlu0 %v505_v21 }
 0xce5   :  { %v495_v22 = vpop.xlane.xlu0 %494 }
 0xce6   :  { %v496_v23 = vrot.slane %v495_v22, 4 }
 0xce8   :  { %v497_v24 = vadd.f32 %v496_v23, %v495_v22 }
 0xce9   :  { %v507_v25 = vpop.xlane.xlu0 %506 }
 0xcea   :  { %v498_v26 = vrot.slane %v497_v24, 2  ;;  %v508_v27 = vrot.slane %v507_v25, 4 }
 0xcec   :  { %v509_v28 = vadd.f32 %v508_v27, %v507_v25  ;;  %v499_v29 = vadd.f32 %v498_v26, %v497_v24 }
 0xcee   :  { %v510_v30 = vrot.slane %v509_v28, 2  ;;  %v500_v31 = vrot.slane %v499_v29, 1 }
 0xcf0   :  { %v511_v32 = vadd.f32 %v510_v30, %v509_v28  ;;  %v501_v33 = vadd.f32 %v500_v31, %v499_v29 }
 0xcf2   :  { %636 = vpush %v501_v33  ;;  %v512_v8 = vrot.slane %v511_v32, 1 }
 0xcf4   :  { %v513_v34 = vadd.f32 %v512_v8, %v511_v32 }
 0xcf6   :  { %638 = vpush %v513_v34 }
 0xd23   :  { %s637_s0 = spop %636 }
 0xd24   :  { %s503_s4 = sadd.f32 5.5451775, %s637_s0 }
 0xd26   :  { %s516_s18 = smul.f32 0.5, %s503_s4 }
 0xd27   :  { %s639_s19 = spop %638 }
 0xd28   :  { %s515_s20 = smul.f32 0.5, %s639_s19 }
 0xd2a   :  { %s517_s17 = ssub.f32 %s515_s20, %s516_s18 }
 0xd2c   :  { %519 = sst [smem:[#allocation3]] %s517_s17 }
 0xd2d   :  { %787 = shalt.err (!%p784_p5)
}
 0xd2e   :  { %s899_s10 = smov [#allocation3]  }
 0xd2f   :  { %527 = dma.smem_to_hbm %s899_s10, 16, %s1244_s1, [#allocation4]  }
 0xd30   :  { %842 = dma.done.wait [#allocation4], 16  }
 0xd31   :  { %843 = vsyncadd [#allocation4], 4294967280 }
 0xd32   :  { %531 = sfence }
 0xd33   :  { %532 = vsyncpa [#allocation4], 1 }

</bundles_post_ra>
